<compile_context>
chip_gen: v5e
topology: v5e:2x2
jax: 0.10.0
libtpu: 0.0.40
codegen_flags: <defaults>
</compile_context>

<pallas_src>
import functools
import math

import jax
import jax.numpy as jnp
from jax.experimental import pallas as pl
from jax.experimental.pallas import tpu as pltpu

_LANE = 128
_SUBLANE = 8


def _cdiv(a, b):
    return -(-a // b)


def _round_up(a, b):
    return _cdiv(a, b) * b


def _normalize_rows_f32(x):
    # torch.nn.functional.normalize: x / max(||x||, eps);
    # max(sqrt(ss), eps) == sqrt(max(ss, eps^2)) -> single rsqrt, no divide.
    eps = 1e-12
    ss = jnp.sum(x * x, axis=1, keepdims=True)
    return x * jax.lax.rsqrt(jnp.maximum(ss, eps * eps))


def _cos_tile(x_ref, wn_ref):
    """cos tile = (normalize(x) @ wn.T) / 10, f32 accumulation on the MXU."""
    xn = _normalize_rows_f32(x_ref[...].astype(jnp.float32))
    wn = wn_ref[...]
    # Contract dim 1 of both operands (no RHS transpose materialization).
    return jax.lax.dot_general(
        xn.astype(wn.dtype), wn,
        dimension_numbers=(((1,), (1,)), ((), ())),
        preferred_element_type=jnp.float32) * 0.1


def _shifted_logit(cos, s, m):
    """s * cos(acos(c) + m) with sqrt(1-c^2) ~ 1 - c^2/2 - c^4/8 (|c| <= 0.1)."""
    c2 = cos * cos
    sin_a = 1.0 - 0.5 * c2 - 0.125 * (c2 * c2)
    return s * (cos * math.cos(m) - sin_a * math.sin(m))


# --------------------------- kernels ---------------------------------------


def _arcloss_single_kernel(x_ref, wn_ref, o_ref, *, s, m, num_pad_classes):
    """Resident-weight single pass.

    x_ref : [TB, D]      raw feature tile (f32)
    wn_ref: [C_pad, D]   pre-normalized weights; padded rows are exact zeros
    o_ref : [TB, C_pad]  f32 output, lane-dense (C_pad % 128 == 0)
    """
    cos = _cos_tile(x_ref, wn_ref)                       # [TB, C_pad] f32
    logit_top = _shifted_logit(cos, s, m)
    e = jnp.exp(s * cos)
    total = jnp.sum(e, axis=1, keepdims=True)            # [TB, 1]
    if num_pad_classes:
        # Padded weight rows give cos == 0 exactly -> exp(0) == 1 each.
        total = total - float(num_pad_classes)
    # log(top / (top + down)) == logit_top - log(exp(logit_top) + total - e)
    o_ref[...] = logit_top - jnp.log(jnp.exp(logit_top) + (total - e))


def _arcloss_rowsum_kernel(x_ref, wn_ref, total_ref, *, s, num_pad_classes):
    """Class-tiled pass 1: accumulate sum_j exp(s*cos_ij) over class tiles."""
    j = pl.program_id(1)

    @pl.when(j == 0)
    def _():
        total_ref[...] = jnp.zeros_like(total_ref)

    cos = _cos_tile(x_ref, wn_ref)                       # [TB, TC] f32
    total_ref[...] += jnp.sum(jnp.exp(s * cos), axis=1, keepdims=True)

    if num_pad_classes:
        @pl.when(j == pl.num_programs(1) - 1)
        def _():
            total_ref[...] -= float(num_pad_classes)


def _arcloss_out_kernel(x_ref, wn_ref, total_ref, o_ref, *, s, m):
    """Class-tiled pass 2: recompute cos per tile and write the output."""
    cos = _cos_tile(x_ref, wn_ref)                       # [TB, TC] f32
    logit_top = _shifted_logit(cos, s, m)
    e = jnp.exp(s * cos)
    o_ref[...] = logit_top - jnp.log(jnp.exp(logit_top) + (total_ref[...] - e))


# --------------------------- wrapper ----------------------------------------


def _vmem_budget_bytes():
    """Generation-aware scoped-VMEM budget (v5e/v6e: 128 MiB phys, v7x: 64)."""
    try:
        phys = int(pltpu.get_tpu_info().vmem_capacity_bytes)
    except Exception:
        phys = 64 << 20          # conservative: v7x per-core physical VMEM
    return max(min(phys - (8 << 20), 100 << 20), 16 << 20)


def arc_loss_forward(feature, weights, *, s=32.0, m=0.5,
                     matmul_dtype=jnp.bfloat16,
                     max_batch_tile=256,
                     class_tile=None,
                     vmem_budget_bytes=None):
    """feature: [B, D], weights: [C, D] -> [B, C] (float32 log-probs)."""
    feature = jnp.asarray(feature, jnp.float32)
    weights = jnp.asarray(weights, jnp.float32)
    B, D = feature.shape
    C, Dw = weights.shape
    assert D == Dw, (feature.shape, weights.shape)

    s = float(s)
    m = float(m)
    wbytes = jnp.dtype(matmul_dtype).itemsize
    if vmem_budget_bytes is None:
        vmem_budget_bytes = _vmem_budget_bytes()
    vmem_budget_bytes = int(vmem_budget_bytes)

    # ---- Hoisted, one-time weight L2-normalization (not per grid step). ----
    wn = _normalize_rows_f32(weights).astype(matmul_dtype)

    # ---- Batch tiling: balanced tiles (minimal zero padding); >= 2 tiles
    #      for B >= 16 so the "parallel" axis can shard across both v7x TCs.
    nb = max(_cdiv(B, int(max_batch_tile)), 2 if B >= 16 else 1)
    tb = _round_up(_cdiv(B, nb), _SUBLANE)
    B_pad = nb * tb
    x = feature if B_pad == B else jnp.pad(feature, ((0, B_pad - B), (0, 0)))

    # ---- Resident-weight single pass vs. class-tiled two-pass selection. ---
    c_pad_resident = _round_up(C, _LANE)

    def _resident_bytes(c_pad):
        return (c_pad * D * wbytes          # weights, single-buffered
                + 2 * tb * D * 4            # feature double-buffer
                + 2 * tb * c_pad * 4        # output double-buffer
                + 4 * tb * c_pad * 4        # epilogue temporaries headroom
                + (2 << 20))

    use_resident = (class_tile is None
                    and _resident_bytes(c_pad_resident) <= vmem_budget_bytes)

    if use_resident:
        C_pad = c_pad_resident
        wn_p = wn if C_pad == C else jnp.pad(wn, ((0, C_pad - C), (0, 0)))

        kernel = functools.partial(_arcloss_single_kernel, s=s, m=m,
                                   num_pad_classes=C_pad - C)
        cost = pl.CostEstimate(
            flops=2 * B_pad * C_pad * D,
            transcendentals=3 * B_pad * C_pad,        # exp, exp, log
            bytes_accessed=(4 * B_pad * D + wbytes * C_pad * D
                            + 4 * B_pad * C_pad))
        cparams = pltpu.CompilerParams(
            dimension_semantics=("parallel",),
            vmem_limit_bytes=vmem_budget_bytes)

        def _call(weight_spec):
            return pl.pallas_call(
                kernel,
                out_shape=jax.ShapeDtypeStruct((B_pad, C_pad), jnp.float32),
                grid_spec=pltpu.PrefetchScalarGridSpec(
                    num_scalar_prefetch=0,
                    grid=(nb,),
                    in_specs=[pl.BlockSpec((tb, D), lambda i: (i, 0)),
                              weight_spec],
                    out_specs=pl.BlockSpec((tb, C_pad), lambda i: (i, 0))),
                compiler_params=cparams,
                cost_estimate=cost,
            )(x, wn_p)

        try:
            # Grid-invariant weight block: single-buffer it (halves its VMEM
            # footprint — the biggest VMEM lever for the resident path).
            out = _call(pl.BlockSpec((C_pad, D), lambda i: (0, 0),
                                     pipeline_mode=pl.Buffered(1)))
        except Exception:
            # pipeline_mode not honored by this lowering -> default buffering.
            out = _call(pl.BlockSpec((C_pad, D), lambda i: (0, 0)))

    else:
        # ---- Class-tiled two-pass path (VMEM-bounded; needed well before the
        #      v7x 64 MiB ceiling at realistic C*D). -------------------------
        if class_tile is None:
            def _tiled_bytes(tc_):
                return (2 * tc_ * D * wbytes      # weight tile double-buffer
                        + 2 * tb * D * 4          # feature double-buffer
                        + 2 * tb * tc_ * 4        # output double-buffer
                        + 4 * tb * tc_ * 4        # temporaries headroom
                        + (2 << 20))
            tc = max(c_pad_resident, _LANE)
            while tc > _LANE and _tiled_bytes(tc) > vmem_budget_bytes:
                tc -= _LANE
            # TODO(synk): if even a 128-wide class tile overflows the budget
            # (very large D), also shrink tb and/or tile the feature dim.
        else:
            tc = _round_up(int(class_tile), _LANE)
        C_pad = _round_up(C, tc)
        nc = C_pad // tc
        wn_p = wn if C_pad == C else jnp.pad(wn, ((0, C_pad - C), (0, 0)))

        # Pass 1: per-row sum of exp(s*cos) over all (padded) classes.
        total = pl.pallas_call(
            functools.partial(_arcloss_rowsum_kernel, s=s,
                              num_pad_classes=C_pad - C),
            out_shape=jax.ShapeDtypeStruct((B_pad, 1), jnp.float32),
            grid_spec=pltpu.PrefetchScalarGridSpec(
                num_scalar_prefetch=0,
                grid=(nb, nc),
                in_specs=[pl.BlockSpec((tb, D), lambda i, j: (i, 0)),
                          pl.BlockSpec((tc, D), lambda i, j: (j, 0))],
                out_specs=pl.BlockSpec((tb, 1), lambda i, j: (i, 0))),
            compiler_params=pltpu.CompilerParams(
                dimension_semantics=("parallel", "arbitrary"),
                vmem_limit_bytes=vmem_budget_bytes),
            cost_estimate=pl.CostEstimate(
                flops=2 * B_pad * C_pad * D,
                transcendentals=B_pad * C_pad,
                bytes_accessed=(4 * B_pad * D * nc + wbytes * C_pad * D * nb
                                + 4 * B_pad)),
        )(x, wn_p)

        # Pass 2: recompute logits per tile and write the output.
        out = pl.pallas_call(
            functools.partial(_arcloss_out_kernel, s=s, m=m),
            out_shape=jax.ShapeDtypeStruct((B_pad, C_pad), jnp.float32),
            grid_spec=pltpu.PrefetchScalarGridSpec(
                num_scalar_prefetch=0,
                grid=(nb, nc),
                in_specs=[pl.BlockSpec((tb, D), lambda i, j: (i, 0)),
                          pl.BlockSpec((tc, D), lambda i, j: (j, 0)),
                          pl.BlockSpec((tb, 1), lambda i, j: (i, 0))],
                out_specs=pl.BlockSpec((tb, tc), lambda i, j: (i, j))),
            compiler_params=pltpu.CompilerParams(
                dimension_semantics=("parallel", "parallel"),
                vmem_limit_bytes=vmem_budget_bytes),
            cost_estimate=pl.CostEstimate(
                flops=2 * B_pad * C_pad * D,
                transcendentals=3 * B_pad * C_pad,
                bytes_accessed=(4 * B_pad * D * nc + wbytes * C_pad * D * nb
                                + 4 * B_pad * nc + 4 * B_pad * C_pad)),
        )(x, wn_p, total)

    # Slice off padding only when it exists (no extra HBM copy when B, C are
    # already aligned); downstream consumers can fuse this slice.
    if B_pad != B or C_pad != C:
        out = out[:B, :C]
    return out


# --------------------------- reference & test -------------------------------


def arc_loss_reference(feature, weights, *, s=32.0, m=0.5):
    """Pure-JAX reference mirroring the PyTorch forward exactly."""
    eps = 1e-12
    x = feature / jnp.maximum(
        jnp.linalg.norm(feature, axis=1, keepdims=True), eps)
    w = weights / jnp.maximum(
        jnp.linalg.norm(weights, axis=1, keepdims=True), eps)
    cos = (x @ w.T) / 10.0
    a = jnp.arccos(cos)
    top = jnp.exp(s * jnp.cos(a + m))
    e = jnp.exp(s * jnp.cos(a))
    down = jnp.sum(e, axis=1, keepdims=True) - e
    return jnp.log(top / (top + down))


if __name__ == "__main__":
    s, m = 32.0, 0.5
    key = jax.random.PRNGKey(0)
    k_feat, k_w, k_feat2, k_w2 = jax.random.split(key, 4)

    # Small, deterministic shapes consistent with the module:
    # batch=8, feature_dim=32, num_classes=16.
    B, D, C = 8, 32, 16
    feature = jax.random.normal(k_feat, (B, D), dtype=jnp.float32)
    weights = jax.random.normal(k_w, (C, D), dtype=jnp.float32)
    ref = arc_loss_reference(feature, weights, s=s, m=m)

    # 1) f32 MXU path (resident-weight single pass): faithful to the PyTorch
    #    forward, tight tolerance.
    out_f32 = jax.block_until_ready(
        arc_loss_forward(feature, weights, s=s, m=m, matmul_dtype=jnp.float32))
    assert out_f32.shape == (B, C)
    assert jnp.allclose(out_f32, ref, atol=2e-4, rtol=2e-4), (
        f"f32 max abs err = {jnp.max(jnp.abs(out_f32 - ref))}")

    # 2) Default bf16-matmul path (f32 accumulate): |cos| <= 0.1, so bf16
    #    input rounding perturbs the log-output by O(1e-2) at most.
    out_bf16 = jax.block_until_ready(
        arc_loss_forward(feature, weights, s=s, m=m))
    assert out_bf16.shape == (B, C)
    assert jnp.allclose(out_bf16, ref, atol=5e-2, rtol=1e-2), (
        f"bf16 max abs err = {jnp.max(jnp.abs(out_bf16 - ref))}")

    # 3) Class-tiled two-pass path (forced via class_tile): this is the path
    #    the wrapper picks automatically when resident weights would blow the
    #    VMEM budget (important for v7x's 64 MiB). Also exercises batch
    #    padding (B=40 -> 2 tiles of 24) and class padding (C=300 -> 384).
    B2, D2, C2 = 40, 64, 300
    feature2 = jax.random.normal(k_feat2, (B2, D2), dtype=jnp.float32)
    weights2 = jax.random.normal(k_w2, (C2, D2), dtype=jnp.float32)
    ref2 = arc_loss_reference(feature2, weights2, s=s, m=m)
    out2 = jax.block_until_ready(
        arc_loss_forward(feature2, weights2, s=s, m=m,
                         matmul_dtype=jnp.float32, class_tile=128))
    assert out2.shape == (B2, C2)
    assert jnp.allclose(out2, ref2, atol=2e-4, rtol=2e-4), (
        f"tiled max abs err = {jnp.max(jnp.abs(out2 - ref2))}")

    print("KERNEL_OK")
</pallas_src>

<mosaic_0001>
module attributes {stable_mosaic.version = 11 : i64} {
  func.func @_arcloss_single_kernel(%arg0: i32, %arg1: memref<8x32xf32, #tpu.memory_space<vmem>>, %arg2: memref<128x32xf32, #tpu.memory_space<vmem>>, %arg3: memref<8x128xf32, #tpu.memory_space<vmem>>) attributes {dimension_semantics = [#tpu.dimension_semantics<parallel>], iteration_bounds = array<i64: 1>, scalar_prefetch = 0 : i64, scratch_operands = 0 : i64, tpu.core_type = #tpu.core_type<tc>, window_params = [{transform_indices = @transform_0, window_bounds = array<i64: 8, 32>}, {pipeline_mode = #tpu.pipeline_mode<synchronous>, transform_indices = @transform_1, window_bounds = array<i64: 128, 32>}, {transform_indices = @transform_2, window_bounds = array<i64: 8, 128>}]} {
    %c0 = arith.constant 0 : index
    %c0_0 = arith.constant 0 : index
    %0 = vector.load %arg1[%c0, %c0_0] : memref<8x32xf32, #tpu.memory_space<vmem>>, vector<8x32xf32>
    %1 = arith.mulf %0, %0 : vector<8x32xf32>
    %cst = arith.constant dense<0.000000e+00> : vector<8xf32>
    %2 = vector.multi_reduction <add>, %1, %cst [1] : vector<8x32xf32> to vector<8xf32>
    %3 = vector.shape_cast %2 : vector<8xf32> to vector<8x1xf32>
    %cst_1 = arith.constant 1.000000e-24 : f32
    %4 = vector.broadcast %cst_1 : f32 to vector<8x1xf32>
    %5 = arith.maximumf %3, %4 : vector<8x1xf32>
    %6 = math.rsqrt %5 : vector<8x1xf32>
    %7 = vector.broadcast %6 : vector<8x1xf32> to vector<8x32xf32>
    %8 = arith.mulf %0, %7 : vector<8x32xf32>
    %c0_2 = arith.constant 0 : index
    %c0_3 = arith.constant 0 : index
    %9 = vector.load %arg2[%c0_2, %c0_3] : memref<128x32xf32, #tpu.memory_space<vmem>>, vector<128x32xf32>
    %cst_4 = arith.constant dense<0.000000e+00> : vector<8x128xf32>
    %10 = tpu.matmul %8, %9, %cst_4 {dimension_numbers = #tpu.dot_dimension_numbers<[1], [1], [0], [0], [0, 0, 1, 0], [], []>} : vector<8x32xf32>, vector<128x32xf32>, vector<8x128xf32> -> vector<8x128xf32>
    %cst_5 = arith.constant 1.000000e-01 : f32
    %11 = vector.broadcast %cst_5 : f32 to vector<8x128xf32>
    %12 = arith.mulf %10, %11 : vector<8x128xf32>
    %13 = arith.mulf %12, %12 : vector<8x128xf32>
    %cst_6 = arith.constant 5.000000e-01 : f32
    %14 = vector.broadcast %cst_6 : f32 to vector<8x128xf32>
    %15 = arith.mulf %14, %13 : vector<8x128xf32>
    %cst_7 = arith.constant 1.000000e+00 : f32
    %16 = vector.broadcast %cst_7 : f32 to vector<8x128xf32>
    %17 = arith.subf %16, %15 : vector<8x128xf32>
    %18 = arith.mulf %13, %13 : vector<8x128xf32>
    %cst_8 = arith.constant 1.250000e-01 : f32
    %19 = vector.broadcast %cst_8 : f32 to vector<8x128xf32>
    %20 = arith.mulf %19, %18 : vector<8x128xf32>
    %21 = arith.subf %17, %20 : vector<8x128xf32>
    %cst_9 = arith.constant 0.87758255 : f32
    %22 = vector.broadcast %cst_9 : f32 to vector<8x128xf32>
    %23 = arith.mulf %12, %22 : vector<8x128xf32>
    %cst_10 = arith.constant 0.47942555 : f32
    %24 = vector.broadcast %cst_10 : f32 to vector<8x128xf32>
    %25 = arith.mulf %21, %24 : vector<8x128xf32>
    %26 = arith.subf %23, %25 : vector<8x128xf32>
    %cst_11 = arith.constant 3.200000e+01 : f32
    %27 = vector.broadcast %cst_11 : f32 to vector<8x128xf32>
    %28 = arith.mulf %27, %26 : vector<8x128xf32>
    %cst_12 = arith.constant 3.200000e+01 : f32
    %29 = vector.broadcast %cst_12 : f32 to vector<8x128xf32>
    %30 = arith.mulf %29, %12 : vector<8x128xf32>
    %31 = math.exp %30 : vector<8x128xf32>
    %cst_13 = arith.constant dense<0.000000e+00> : vector<8xf32>
    %32 = vector.multi_reduction <add>, %31, %cst_13 [1] : vector<8x128xf32> to vector<8xf32>
    %33 = vector.shape_cast %32 : vector<8xf32> to vector<8x1xf32>
    %cst_14 = arith.constant 1.120000e+02 : f32
    %34 = vector.broadcast %cst_14 : f32 to vector<8x1xf32>
    %35 = arith.subf %33, %34 : vector<8x1xf32>
    %36 = math.exp %28 : vector<8x128xf32>
    %37 = vector.broadcast %35 : vector<8x1xf32> to vector<8x128xf32>
    %38 = arith.subf %37, %31 : vector<8x128xf32>
    %39 = arith.addf %36, %38 : vector<8x128xf32>
    %40 = math.log %39 : vector<8x128xf32>
    %41 = arith.subf %28, %40 : vector<8x128xf32>
    %c0_15 = arith.constant 0 : index
    %c0_16 = arith.constant 0 : index
    %42 = vector.load %arg3[%c0_15, %c0_16] : memref<8x128xf32, #tpu.memory_space<vmem>>, vector<8x128xf32>
    tpu.vector_store %arg3[%c0_15, %c0_16], %41 {strides = array<i32>} : memref<8x128xf32, #tpu.memory_space<vmem>>, vector<8x128xf32>,
    return
  }
  func.func @transform_0(%arg0: i32) -> (i32, i32) {
    %c0_i32 = arith.constant 0 : i32
    %c0_i32_0 = arith.constant 0 : i32
    return %arg0, %c0_i32 : i32, i32
  }
  func.func @transform_1(%arg0: i32) -> (i32, i32) {
    %c0_i32 = arith.constant 0 : i32
    %c0_i32_0 = arith.constant 0 : i32
    %c0_i32_1 = arith.constant 0 : i32
    return %c0_i32, %c0_i32_0 : i32, i32
  }
  func.func @transform_2(%arg0: i32) -> (i32, i32) {
    %c0_i32 = arith.constant 0 : i32
    %c0_i32_0 = arith.constant 0 : i32
    return %arg0, %c0_i32 : i32, i32
  }
}

module attributes {stable_mosaic.version = 11 : i64} {
  func.func @_arcloss_single_kernel(%arg0: i32, %arg1: memref<8x32xf32, #tpu.memory_space<vmem>>, %arg2: memref<128x32xf32, #tpu.memory_space<vmem>>, %arg3: memref<8x128xf32, #tpu.memory_space<vmem>>) attributes {dimension_semantics = [#tpu.dimension_semantics<parallel>], iteration_bounds = array<i64: 1>, scalar_prefetch = 0 : i64, scratch_operands = 0 : i64, tpu.core_type = #tpu.core_type<tc>, window_params = [{transform_indices = @transform_0, window_bounds = array<i64: 8, 32>}, {pipeline_mode = #tpu.pipeline_mode<synchronous>, transform_indices = @transform_1, window_bounds = array<i64: 128, 32>}, {transform_indices = @transform_2, window_bounds = array<i64: 8, 128>}]} {
    %c0 = arith.constant 0 : index
    %c0_0 = arith.constant 0 : index
    %0 = vector.load %arg1[%c0, %c0_0] : memref<8x32xf32, #tpu.memory_space<vmem>>, vector<8x32xf32>
    %1 = arith.mulf %0, %0 : vector<8x32xf32>
    %cst = arith.constant dense<0.000000e+00> : vector<8xf32>
    %2 = vector.multi_reduction <add>, %1, %cst [1] : vector<8x32xf32> to vector<8xf32>
    %3 = vector.shape_cast %2 : vector<8xf32> to vector<8x1xf32>
    %cst_1 = arith.constant 1.000000e-24 : f32
    %4 = vector.broadcast %cst_1 : f32 to vector<8x1xf32>
    %5 = arith.maximumf %3, %4 : vector<8x1xf32>
    %6 = math.rsqrt %5 : vector<8x1xf32>
    %7 = vector.broadcast %6 : vector<8x1xf32> to vector<8x32xf32>
    %8 = arith.mulf %0, %7 : vector<8x32xf32>
    %c0_2 = arith.constant 0 : index
    %c0_3 = arith.constant 0 : index
    %9 = vector.load %arg2[%c0_2, %c0_3] : memref<128x32xf32, #tpu.memory_space<vmem>>, vector<128x32xf32>
    %cst_4 = arith.constant dense<0.000000e+00> : vector<8x128xf32>
    %10 = tpu.matmul %8, %9, %cst_4 {dimension_numbers = #tpu.dot_dimension_numbers<[1], [1], [0], [0], [0, 0, 1, 0], [], []>} : vector<8x32xf32>, vector<128x32xf32>, vector<8x128xf32> -> vector<8x128xf32>
    %cst_5 = arith.constant 1.000000e-01 : f32
    %11 = vector.broadcast %cst_5 : f32 to vector<8x128xf32>
    %12 = arith.mulf %10, %11 : vector<8x128xf32>
    %13 = arith.mulf %12, %12 : vector<8x128xf32>
    %cst_6 = arith.constant 5.000000e-01 : f32
    %14 = vector.broadcast %cst_6 : f32 to vector<8x128xf32>
    %15 = arith.mulf %14, %13 : vector<8x128xf32>
    %cst_7 = arith.constant 1.000000e+00 : f32
    %16 = vector.broadcast %cst_7 : f32 to vector<8x128xf32>
    %17 = arith.subf %16, %15 : vector<8x128xf32>
    %18 = arith.mulf %13, %13 : vector<8x128xf32>
    %cst_8 = arith.constant 1.250000e-01 : f32
    %19 = vector.broadcast %cst_8 : f32 to vector<8x128xf32>
    %20 = arith.mulf %19, %18 : vector<8x128xf32>
    %21 = arith.subf %17, %20 : vector<8x128xf32>
    %cst_9 = arith.constant 0.87758255 : f32
    %22 = vector.broadcast %cst_9 : f32 to vector<8x128xf32>
    %23 = arith.mulf %12, %22 : vector<8x128xf32>
    %cst_10 = arith.constant 0.47942555 : f32
    %24 = vector.broadcast %cst_10 : f32 to vector<8x128xf32>
    %25 = arith.mulf %21, %24 : vector<8x128xf32>
    %26 = arith.subf %23, %25 : vector<8x128xf32>
    %cst_11 = arith.constant 3.200000e+01 : f32
    %27 = vector.broadcast %cst_11 : f32 to vector<8x128xf32>
    %28 = arith.mulf %27, %26 : vector<8x128xf32>
    %cst_12 = arith.constant 3.200000e+01 : f32
    %29 = vector.broadcast %cst_12 : f32 to vector<8x128xf32>
    %30 = arith.mulf %29, %12 : vector<8x128xf32>
    %31 = math.exp %30 : vector<8x128xf32>
    %cst_13 = arith.constant dense<0.000000e+00> : vector<8xf32>
    %32 = vector.multi_reduction <add>, %31, %cst_13 [1] : vector<8x128xf32> to vector<8xf32>
    %33 = vector.shape_cast %32 : vector<8xf32> to vector<8x1xf32>
    %cst_14 = arith.constant 1.120000e+02 : f32
    %34 = vector.broadcast %cst_14 : f32 to vector<8x1xf32>
    %35 = arith.subf %33, %34 : vector<8x1xf32>
    %36 = math.exp %28 : vector<8x128xf32>
    %37 = vector.broadcast %35 : vector<8x1xf32> to vector<8x128xf32>
    %38 = arith.subf %37, %31 : vector<8x128xf32>
    %39 = arith.addf %36, %38 : vector<8x128xf32>
    %40 = math.log %39 : vector<8x128xf32>
    %41 = arith.subf %28, %40 : vector<8x128xf32>
    %c0_15 = arith.constant 0 : index
    %c0_16 = arith.constant 0 : index
    %42 = vector.load %arg3[%c0_15, %c0_16] : memref<8x128xf32, #tpu.memory_space<vmem>>, vector<8x128xf32>
    tpu.vector_store %arg3[%c0_15, %c0_16], %41 {strides = array<i32>} : memref<8x128xf32, #tpu.memory_space<vmem>>, vector<8x128xf32>,
    return
  }
  func.func @transform_0(%arg0: i32) -> (i32, i32) {
    %c0_i32 = arith.constant 0 : i32
    %c0_i32_0 = arith.constant 0 : i32
    return %arg0, %c0_i32 : i32, i32
  }
  func.func @transform_1(%arg0: i32) -> (i32, i32) {
    %c0_i32 = arith.constant 0 : i32
    %c0_i32_0 = arith.constant 0 : i32
    %c0_i32_1 = arith.constant 0 : i32
    return %c0_i32, %c0_i32_0 : i32, i32
  }
  func.func @transform_2(%arg0: i32) -> (i32, i32) {
    %c0_i32 = arith.constant 0 : i32
    %c0_i32_0 = arith.constant 0 : i32
    return %arg0, %c0_i32 : i32, i32
  }
}

</mosaic_0001>

<bundles_post_ra>
// kernel: tpu_custom_call.1
= control target key start
LH: loop header
LB: loop body
LE: loop exit
PB: predicated region body
PF: predicated region fallthrough
CT: control target
= control target key end

     0   :  { %vm14_vm0 = vcmask 261120   ;;  %s299_s0 = inlined_call_operand.vmem [shape: f32[8,32], index: 0, kind: input, shape index: {}]   ;;  %s300_s1 = inlined_call_operand.vmem [shape: f32[128,32], index: 1, kind: input, shape index: {}]   ;;  %s301_s2 = inlined_call_operand.hbm [shape: f32[8,128], index: 2, kind: output, shape index: {}]  }
   0x1   :  { %v12_v0 = vld [vmem:[%s299_s0] sm:$0xff]  ;;  %v45_v1 = vld [vmem:[%s300_s1 + $0x78] sm:$0xff]  ;;  %v44_v3 = vld [vmem:[%s300_s1 + $0x70] sm:$0xff] }
   0x2   :  { %v13_v2 = vmul.f32 %v12_v0, %v12_v0  ;;  %158 = vmatpush.xpose.msk.msra.mxu0 %vm14_vm0, %v45_v1 }
   0x4   :  { %v15_v4 = vsel %vm14_vm0, %v13_v2, 0.0 }
   0x5   :  { %7 = vsyncpa [#allocation3], 0  ;;  %16 = vadd.xlane.f32.xlu0 %v15_v4  ;;  %v43_v5 = vld [vmem:[%s300_s1 + $0x68] sm:$0xff]  ;;  %v42_v6 = vld [vmem:[%s300_s1 + $0x60] sm:$0xff]  ;;  %s149_s16 = sshll.u32 %s301_s2, 4  ;;  %s150_s16 = int_to_ptr.hbm [resolvable:$true] %s149_s16 }
   0x6   :  { %159 = vmatpush.xpose.msk.msra.mxu0 %vm14_vm0, %v44_v3  ;;  %v41_v7 = vld [vmem:[%s300_s1 + $0x58] sm:$0xff]  ;;  %v40_v8 = vld [vmem:[%s300_s1 + $0x50] sm:$0xff]  ;;  %v39_v9 = vld [vmem:[%s300_s1 + $0x48] sm:$0xff] }
   0x7   :  { %v38_v10 = vld [vmem:[%s300_s1 + $0x40] sm:$0xff]  ;;  %v37_v11 = vld [vmem:[%s300_s1 + $0x38] sm:$0xff]  ;;  %v36_v12 = vld [vmem:[%s300_s1 + $0x30] sm:$0xff] }
   0x8   :  { %v35_v13 = vld [vmem:[%s300_s1 + $0x28] sm:$0xff]  ;;  %v34_v14 = vld [vmem:[%s300_s1 + $0x20] sm:$0xff]  ;;  %v33_v15 = vld [vmem:[%s300_s1 + $0x18] sm:$0xff] }
   0x9   :  { %v32_v16 = vld [vmem:[%s300_s1 + $0x10] sm:$0xff]  ;;  %v31_v17 = vld [vmem:[%s300_s1 + $0x8] sm:$0xff]  ;;  %v30_v18 = vld [vmem:[%s300_s1] sm:$0xff]  ;;  %s211_s1 = smov [#allocation2]  }
   0xa   :  { %160 = vmatpush.xpose.msk.msra.mxu0 %vm14_vm0, %v43_v5  ;;  %s147_s14 = sshll.u32 %s211_s1, 4  ;;  %s148_s14 = int_to_ptr.vmem [resolvable:$true] %s147_s14 }
   0xe   :  { %161 = vmatpush.xpose.msk.msra.mxu0 %vm14_vm0, %v42_v6 }
  0x12   :  { %162 = vmatpush.xpose.msk.msra.mxu0 %vm14_vm0, %v41_v7 }
  0x16   :  { %163 = vmatpush.xpose.msk.msra.mxu0 %vm14_vm0, %v40_v8 }
  0x1a   :  { %164 = vmatpush.xpose.msk.msra.mxu0 %vm14_vm0, %v39_v9 }
  0x1e   :  { %165 = vmatpush.xpose.msk.msra.mxu0 %vm14_vm0, %v38_v10 }
  0x22   :  { %166 = vmatpush.xpose.msk.msra.mxu0 %vm14_vm0, %v37_v11 }
  0x26   :  { %167 = vmatpush.xpose.msk.msra.mxu0 %vm14_vm0, %v36_v12 }
  0x2a   :  { %168 = vmatpush.xpose.msk.msra.mxu0 %vm14_vm0, %v35_v13 }
  0x2e   :  { %169 = vmatpush.xpose.msk.msra.mxu0 %vm14_vm0, %v34_v14 }
  0x32   :  { %170 = vmatpush.xpose.msk.msra.mxu0 %vm14_vm0, %v33_v15 }
  0x36   :  { %171 = vmatpush.xpose.msk.msra.mxu0 %vm14_vm0, %v32_v16 }
  0x3a   :  { %172 = vmatpush.xpose.msk.msra.mxu0 %vm14_vm0, %v31_v17 }
  0x3e   :  { %173 = vmatpush.xpose.msk.msra.mxu0 %vm14_vm0, %v30_v18 }
  0x78   :  { %v17_v19 = vpop.xlane.xlu0 %16 }
  0x79   :  { %v18_v20 = vmax.f32 %v17_v19, 1e-24 }
  0x7b   :  { %177 = vrsqrt.f32 %v18_v20  ;;  %vm25_vm2 = vweird.f32 %v18_v20 }
  0x81   :  { %v178_v21 = vpop.eup %177 }
  0x82   :  { %v20_v22 = vmul.f32 %v178_v21, %v18_v20  ;;  %vm26_vm1 = vweird.f32 %v178_v21 }
  0x83   :  { %vm27_vm3 = vmor %vm25_vm2, %vm26_vm1 }
  0x84   :  { %v21_v23 = vmul.f32 %v178_v21, %v20_v22 }
  0x86   :  { %v22_v24 = vmul.f32 0.5, %v21_v23 }
  0x88   :  { %v23_v25 = vsub.f32 1.5, %v22_v24 }
  0x8a   :  { %v24_v26 = vmul.f32 %v178_v21, %v23_v25 }
  0x8c   :  { %v28_v27 = vsel %vm27_vm3, %v178_v21, %v24_v26 }
  0x8d   :  { %v29_v28 = vmul.f32 %v28_v27, %v12_v0 }
  0x8f   :  { %174 = vmatmul.msk.f32.vlgmr.msra.gmra.mxu0 %vm14_vm0, %v29_v28 }
 0x10c   :  { %v114_v29 = vpop.f32.mrf.mxu0 }
 0x10d   :  { %v117_v30 = vmul.f32 0.1, %v114_v29 }
 0x10f   :  { %v128_v31 = vmul.f32 32.0, %v117_v30  ;;  %v118_v34 = vmul.f32 %v117_v30, %v117_v30  ;;  %v124_v41 = vmul.f32 0.87758255, %v117_v30 }
 0x111   :  { %v129_v32 = vmul.f32 1.442695, %v128_v31  ;;  %v119_v35 = vmul.f32 0.5, %v118_v34  ;;  %v121_v36 = vmul.f32 %v118_v34, %v118_v34 }
 0x113   :  { %179 = vpow2.f32 %v129_v32  ;;  %v120_v37 = vsub.f32 1.0, %v119_v35  ;;  %v122_v38 = vmul.f32 0.125, %v121_v36 }
 0x115   :  { %v123_v39 = vsub.f32 %v120_v37, %v122_v38 }
 0x117   :  { %v125_v40 = vmul.f32 0.47942555, %v123_v39 }
 0x119   :  { %v180_v33 = vpop.eup %179  ;;  %v126_v42 = vsub.f32 %v124_v41, %v125_v40 }
 0x11a   :  { %131 = vadd.xlane.f32.xlu0 %v180_v33 }
 0x11b   :  { %v127_v43 = vmul.f32 32.0, %v126_v42 }
 0x11d   :  { %v134_v44 = vmul.f32 1.442695, %v127_v43 }
 0x11f   :  { %181 = vpow2.f32 %v134_v44 }
 0x125   :  { %v182_v48 = vpop.eup %181 }
 0x18d   :  { %v132_v45 = vpop.xlane.xlu0 %131 }
 0x18e   :  { %v175_v46 = vadd.f32 -112.0, %v132_v45 }
 0x190   :  { %v136_v47 = vsub.f32 %v175_v46, %v180_v33 }
 0x192   :  { %v137_v49 = vadd.f32 %v182_v48, %v136_v47 }
 0x194   :  { %183 = vlog2.f32 %v137_v49 }
 0x19a   :  { %v184_v50 = vpop.eup %183 }
 0x19b   :  { %v139_v51 = vmul.f32 0.6931472, %v184_v50 }
 0x19d   :  { %v140_v52 = vsub.f32 %v127_v43, %v139_v51 }
 0x19f   :  { %141 = vst [vmem:[#allocation2] sm:$0xff] %v140_v52 }
 0x1a0   :  { %152 = dma.vmem_to_hbm [thread:$0]  %s148_s14, 128, %s150_s16, [#allocation3]  }
 0x1a1   :  { %209 = dma.done.wait [#allocation3], 128  }
 0x1a2   :  { %210 = vsyncadd [#allocation3], 4294967168 }
 0x1a3   :  { %157 = vsyncpa [#allocation3], 1 }

// kernel: tpu_custom_call.1
= control target key start
LH: loop header
LB: loop body
LE: loop exit
PB: predicated region body
PF: predicated region fallthrough
CT: control target
= control target key end

     0   :  { %vm14_vm0 = vcmask 261120   ;;  %s299_s0 = inlined_call_operand.vmem [shape: f32[8,32], index: 0, kind: input, shape index: {}]   ;;  %s300_s1 = inlined_call_operand.vmem [shape: f32[128,32], index: 1, kind: input, shape index: {}]   ;;  %s301_s2 = inlined_call_operand.hbm [shape: f32[8,128], index: 2, kind: output, shape index: {}]  }
   0x1   :  { %v12_v0 = vld [vmem:[%s299_s0] sm:$0xff]  ;;  %v45_v1 = vld [vmem:[%s300_s1 + $0x78] sm:$0xff]  ;;  %v44_v3 = vld [vmem:[%s300_s1 + $0x70] sm:$0xff] }
   0x2   :  { %v13_v2 = vmul.f32 %v12_v0, %v12_v0  ;;  %158 = vmatpush.xpose.msk.msra.mxu0 %vm14_vm0, %v45_v1 }
   0x4   :  { %v15_v4 = vsel %vm14_vm0, %v13_v2, 0.0 }
   0x5   :  { %7 = vsyncpa [#allocation3], 0  ;;  %16 = vadd.xlane.f32.xlu0 %v15_v4  ;;  %v43_v5 = vld [vmem:[%s300_s1 + $0x68] sm:$0xff]  ;;  %v42_v6 = vld [vmem:[%s300_s1 + $0x60] sm:$0xff]  ;;  %s149_s16 = sshll.u32 %s301_s2, 4  ;;  %s150_s16 = int_to_ptr.hbm [resolvable:$true] %s149_s16 }
   0x6   :  { %159 = vmatpush.xpose.msk.msra.mxu0 %vm14_vm0, %v44_v3  ;;  %v41_v7 = vld [vmem:[%s300_s1 + $0x58] sm:$0xff]  ;;  %v40_v8 = vld [vmem:[%s300_s1 + $0x50] sm:$0xff]  ;;  %v39_v9 = vld [vmem:[%s300_s1 + $0x48] sm:$0xff] }
   0x7   :  { %v38_v10 = vld [vmem:[%s300_s1 + $0x40] sm:$0xff]  ;;  %v37_v11 = vld [vmem:[%s300_s1 + $0x38] sm:$0xff]  ;;  %v36_v12 = vld [vmem:[%s300_s1 + $0x30] sm:$0xff] }
   0x8   :  { %v35_v13 = vld [vmem:[%s300_s1 + $0x28] sm:$0xff]  ;;  %v34_v14 = vld [vmem:[%s300_s1 + $0x20] sm:$0xff]  ;;  %v33_v15 = vld [vmem:[%s300_s1 + $0x18] sm:$0xff] }
   0x9   :  { %v32_v16 = vld [vmem:[%s300_s1 + $0x10] sm:$0xff]  ;;  %v31_v17 = vld [vmem:[%s300_s1 + $0x8] sm:$0xff]  ;;  %v30_v18 = vld [vmem:[%s300_s1] sm:$0xff]  ;;  %s211_s1 = smov [#allocation2]  }
   0xa   :  { %160 = vmatpush.xpose.msk.msra.mxu0 %vm14_vm0, %v43_v5  ;;  %s147_s14 = sshll.u32 %s211_s1, 4  ;;  %s148_s14 = int_to_ptr.vmem [resolvable:$true] %s147_s14 }
   0xe   :  { %161 = vmatpush.xpose.msk.msra.mxu0 %vm14_vm0, %v42_v6 }
  0x12   :  { %162 = vmatpush.xpose.msk.msra.mxu0 %vm14_vm0, %v41_v7 }
  0x16   :  { %163 = vmatpush.xpose.msk.msra.mxu0 %vm14_vm0, %v40_v8 }
  0x1a   :  { %164 = vmatpush.xpose.msk.msra.mxu0 %vm14_vm0, %v39_v9 }
  0x1e   :  { %165 = vmatpush.xpose.msk.msra.mxu0 %vm14_vm0, %v38_v10 }
  0x22   :  { %166 = vmatpush.xpose.msk.msra.mxu0 %vm14_vm0, %v37_v11 }
  0x26   :  { %167 = vmatpush.xpose.msk.msra.mxu0 %vm14_vm0, %v36_v12 }
  0x2a   :  { %168 = vmatpush.xpose.msk.msra.mxu0 %vm14_vm0, %v35_v13 }
  0x2e   :  { %169 = vmatpush.xpose.msk.msra.mxu0 %vm14_vm0, %v34_v14 }
  0x32   :  { %170 = vmatpush.xpose.msk.msra.mxu0 %vm14_vm0, %v33_v15 }
  0x36   :  { %171 = vmatpush.xpose.msk.msra.mxu0 %vm14_vm0, %v32_v16 }
  0x3a   :  { %172 = vmatpush.xpose.msk.msra.mxu0 %vm14_vm0, %v31_v17 }
  0x3e   :  { %173 = vmatpush.xpose.msk.msra.mxu0 %vm14_vm0, %v30_v18 }
  0x78   :  { %v17_v19 = vpop.xlane.xlu0 %16 }
  0x79   :  { %v18_v20 = vmax.f32 %v17_v19, 1e-24 }
  0x7b   :  { %177 = vrsqrt.f32 %v18_v20  ;;  %vm25_vm2 = vweird.f32 %v18_v20 }
  0x81   :  { %v178_v21 = vpop.eup %177 }
  0x82   :  { %v20_v22 = vmul.f32 %v178_v21, %v18_v20  ;;  %vm26_vm1 = vweird.f32 %v178_v21 }
  0x83   :  { %vm27_vm3 = vmor %vm25_vm2, %vm26_vm1 }
  0x84   :  { %v21_v23 = vmul.f32 %v178_v21, %v20_v22 }
  0x86   :  { %v22_v24 = vmul.f32 0.5, %v21_v23 }
  0x88   :  { %v23_v25 = vsub.f32 1.5, %v22_v24 }
  0x8a   :  { %v24_v26 = vmul.f32 %v178_v21, %v23_v25 }
  0x8c   :  { %v28_v27 = vsel %vm27_vm3, %v178_v21, %v24_v26 }
  0x8d   :  { %v29_v28 = vmul.f32 %v28_v27, %v12_v0 }
  0x8f   :  { %174 = vmatmul.msk.f32.vlgmr.msra.gmra.mxu0 %vm14_vm0, %v29_v28 }
 0x10c   :  { %v114_v29 = vpop.f32.mrf.mxu0 }
 0x10d   :  { %v117_v30 = vmul.f32 0.1, %v114_v29 }
 0x10f   :  { %v128_v31 = vmul.f32 32.0, %v117_v30  ;;  %v118_v34 = vmul.f32 %v117_v30, %v117_v30  ;;  %v124_v41 = vmul.f32 0.87758255, %v117_v30 }
 0x111   :  { %v129_v32 = vmul.f32 1.442695, %v128_v31  ;;  %v119_v35 = vmul.f32 0.5, %v118_v34  ;;  %v121_v36 = vmul.f32 %v118_v34, %v118_v34 }
 0x113   :  { %179 = vpow2.f32 %v129_v32  ;;  %v120_v37 = vsub.f32 1.0, %v119_v35  ;;  %v122_v38 = vmul.f32 0.125, %v121_v36 }
 0x115   :  { %v123_v39 = vsub.f32 %v120_v37, %v122_v38 }
 0x117   :  { %v125_v40 = vmul.f32 0.47942555, %v123_v39 }
 0x119   :  { %v180_v33 = vpop.eup %179  ;;  %v126_v42 = vsub.f32 %v124_v41, %v125_v40 }
 0x11a   :  { %131 = vadd.xlane.f32.xlu0 %v180_v33 }
 0x11b   :  { %v127_v43 = vmul.f32 32.0, %v126_v42 }
 0x11d   :  { %v134_v44 = vmul.f32 1.442695, %v127_v43 }
 0x11f   :  { %181 = vpow2.f32 %v134_v44 }
 0x125   :  { %v182_v48 = vpop.eup %181 }
 0x18d   :  { %v132_v45 = vpop.xlane.xlu0 %131 }
 0x18e   :  { %v175_v46 = vadd.f32 -112.0, %v132_v45 }
 0x190   :  { %v136_v47 = vsub.f32 %v175_v46, %v180_v33 }
 0x192   :  { %v137_v49 = vadd.f32 %v182_v48, %v136_v47 }
 0x194   :  { %183 = vlog2.f32 %v137_v49 }
 0x19a   :  { %v184_v50 = vpop.eup %183 }
 0x19b   :  { %v139_v51 = vmul.f32 0.6931472, %v184_v50 }
 0x19d   :  { %v140_v52 = vsub.f32 %v127_v43, %v139_v51 }
 0x19f   :  { %141 = vst [vmem:[#allocation2] sm:$0xff] %v140_v52 }
 0x1a0   :  { %152 = dma.vmem_to_hbm [thread:$0]  %s148_s14, 128, %s150_s16, [#allocation3]  }
 0x1a1   :  { %209 = dma.done.wait [#allocation3], 128  }
 0x1a2   :  { %210 = vsyncadd [#allocation3], 4294967168 }
 0x1a3   :  { %157 = vsyncpa [#allocation3], 1 }

</bundles_post_ra>
